<compile_context>
chip_gen: v7x
topology: tpu7x:2x2x1
jax: 0.10.0
libtpu: 0.0.40
codegen_flags: <defaults>
</compile_context>

<pallas_src>
import jax
import jax.numpy as jnp
from jax import lax
from jax.experimental import pallas as pl
from jax.experimental.pallas import tpu as pltpu


def _model_kernel(x_ref, w_ref, b_ref, t_ref, o_ref):
    # x_ref: (rb, d)   w_ref: (3, d)   b_ref: (3, 1)
    # t_ref: (1, rb)   o_ref: (1, rb)
    # y[j, n] = sum_k w[j, k] * x[n, k]  ->  (3, rb), lane-dense along rows n.
    y = lax.dot_general(
        w_ref[...], x_ref[...],
        dimension_numbers=(((1,), (1,)), ((), ())),
        preferred_element_type=jnp.float32,
    )
    y = y + b_ref[...]                       # bias broadcast over lanes
    t = t_ref[...]                           # (1, rb)
    y0 = y[0:1, :]                           # early head
    y1 = y[1:2, :]                           # late head
    y2 = y[2:3, :]                           # clipped head
    # early*(1-t) + late*t  ==  y0 + (y1 - y0) * t
    o_ref[...] = y0 + (y1 - y0) * t + jnp.clip(y2, -1.0, 1.0)


def _round_up(v, m):
    return ((v + m - 1) // m) * m


def _round_down(v, m):
    return (v // m) * m


# Cached dimension_semantics accepted by this chip (CORE_PARALLEL shards the
# row axis across both TensorCores on v7x; single-TC chips may reject it).
_SEMANTICS = {"value": None}
_CORE_PARALLEL = getattr(pltpu, "CORE_PARALLEL", None)


def _build_call(rb, grid_n, d, n_lane, semantics, vmem_limit, cost):
    return pl.pallas_call(
        _model_kernel,
        out_shape=jax.ShapeDtypeStruct((1, n_lane), jnp.float32),
        grid=(grid_n,),
        in_specs=[
            pl.BlockSpec((rb, d), lambda i: (i, 0)),    # x row stripe (last block masked)
            pl.BlockSpec((3, d), lambda i: (0, 0)),     # stacked weights (resident)
            pl.BlockSpec((3, 1), lambda i: (0, 0)),     # stacked biases (resident)
            pl.BlockSpec((1, rb), lambda i: (0, i)),    # t row tile (lane-dense)
        ],
        out_specs=pl.BlockSpec((1, rb), lambda i: (0, i)),  # lane-dense output
        compiler_params=pltpu.CompilerParams(
            dimension_semantics=semantics,
            vmem_limit_bytes=vmem_limit,
        ),
        cost_estimate=cost,
    )


def model_forward(x, t, w_rows, b, *, row_block=None, tile_budget_bytes=4 << 20):
    """x: (N, d) f32, t: (N,) f32, w_rows: (3, d) rows [early, late, clipped],
    b: (3,) biases in the same order.  Returns (N,) f32."""
    N, d = x.shape
    x = x.astype(jnp.float32)
    t = t.astype(jnp.float32)
    w_rows = w_rows.astype(jnp.float32)
    b2 = b.astype(jnp.float32).reshape(3, 1)

    d_pad = _round_up(d, 128)            # lanes the x tile actually occupies in VMEM
    n_lane = _round_up(N, 128)

    # Grow the row tile from a byte budget (x is read exactly once; big tiles
    # amortize the ~0.35 us/step grid overhead of this HBM-bound kernel).
    budget_rb = max(128, _round_down(tile_budget_bytes // (4 * d_pad), 128))
    if row_block is None:
        rb = budget_rb
    else:
        rb = max(128, _round_up(row_block, 128))   # always a multiple of 128
        rb = min(rb, budget_rb)
    rb = min(rb, n_lane)

    grid_n = pl.cdiv(N, rb)              # == cdiv(n_lane, rb) since rb % 128 == 0

    # Explicit scoped-VMEM budget: double-buffered, lane/sublane-padded tiles
    # plus slack; clamped to stay legal on v5e (16 MiB scoped default) and well
    # inside v7x's 64 MiB physical VMEM.
    x_tile = rb * d_pad * 4
    misc = (8 * d_pad + 8 * 128 + 2 * 8 * rb) * 4      # w, b, t, out tiles (padded)
    vmem_limit = min(max(2 * (x_tile + misc) + (2 << 20), 16 << 20), 32 << 20)

    cost = pl.CostEstimate(
        flops=6 * N * d,
        transcendentals=0,
        bytes_accessed=N * d * 4 + 2 * N * 4 + 4 * d * 4,
    )

    # Only the tiny t / output row gets lane-padded; x is never copied in HBM.
    if n_lane != N:
        t = jnp.pad(t, (0, n_lane - N))
    t2 = t.reshape(1, n_lane)

    args = (x, w_rows, b2, t2)

    if _SEMANTICS["value"] is None:
        _SEMANTICS["value"] = ("parallel",)
        if _CORE_PARALLEL is not None:
            try:
                probe = _build_call(rb, grid_n, d, n_lane,
                                    (_CORE_PARALLEL,), vmem_limit, cost)(*args)
                probe = jax.block_until_ready(probe)
                _SEMANTICS["value"] = (_CORE_PARALLEL,)
                return probe.reshape(n_lane)[:N]
            except Exception:
                pass   # fall back to plain "parallel" semantics below

    out = _build_call(rb, grid_n, d, n_lane,
                      _SEMANTICS["value"], vmem_limit, cost)(*args)
    return out.reshape(n_lane)[:N]


def reference_forward(x, t, w_rows, b):
    y = x @ w_rows.T + b                     # (N, 3)
    early = y[:, 0] * (1.0 - t)
    late = y[:, 1] * t
    clipped = jnp.clip(y[:, 2], -1.0, 1.0)
    return early + late + clipped


if __name__ == "__main__":
    # Small shapes; N deliberately NOT a multiple of 128 to exercise the
    # boundary-block path (no HBM-side padding/copy of x).
    N, d = 300, 32
    key = jax.random.PRNGKey(0)
    kx, kt, kw, kb = jax.random.split(key, 4)

    x = jax.random.normal(kx, (N, d), dtype=jnp.float32)
    t = jax.random.bernoulli(kt, 0.5, (N,)).astype(jnp.float32)

    # NOTE: the torch module zero-initializes all weights/biases (forward would
    # be trivially zero).  Non-zero params actually exercise the kernel;
    # forward semantics are identical.
    w_rows = 0.1 * jax.random.normal(kw, (3, d), dtype=jnp.float32)
    b = 0.1 * jax.random.normal(kb, (3,), dtype=jnp.float32)

    ref = reference_forward(x, t, w_rows, b)

    # Auto (budget-derived) tile: single grid step at this small N.
    out = jax.block_until_ready(model_forward(x, t, w_rows, b))
    assert out.shape == (N,)
    assert jnp.allclose(out, ref, atol=1e-5, rtol=1e-5)

    # Forced small tile: multi-step grid + masked boundary block for x.
    out_small = jax.block_until_ready(model_forward(x, t, w_rows, b, row_block=128))
    assert jnp.allclose(out_small, ref, atol=1e-5, rtol=1e-5)

    # True torch init (all-zero params -> all-zero output).
    zeros_out = jax.block_until_ready(
        model_forward(x, t, jnp.zeros((3, d)), jnp.zeros((3,))))
    assert jnp.allclose(zeros_out, jnp.zeros((N,)), atol=1e-6)

    print("KERNEL_OK")
</pallas_src>

<mosaic_0001>
module attributes {stable_mosaic.version = 11 : i64} {
  func.func @_model_kernel(%arg0: i32, %arg1: memref<384x32xf32, #tpu.memory_space<vmem>>, %arg2: memref<3x32xf32, #tpu.memory_space<vmem>>, %arg3: memref<3x1xf32, #tpu.memory_space<vmem>>, %arg4: memref<1x384xf32, #tpu.memory_space<vmem>>, %arg5: memref<1x384xf32, #tpu.memory_space<vmem>>) attributes {dimension_semantics = [#tpu.dimension_semantics<core_parallel>], iteration_bounds = array<i64: 1>, scalar_prefetch = 0 : i64, scratch_operands = 0 : i64, tpu.core_type = #tpu.core_type<tc>, window_params = [{transform_indices = @transform_0, window_bounds = array<i64: 384, 32>}, {pipeline_mode = #tpu.pipeline_mode<synchronous>, transform_indices = @transform_1, window_bounds = array<i64: 3, 32>}, {pipeline_mode = #tpu.pipeline_mode<synchronous>, transform_indices = @transform_2, window_bounds = array<i64: 3, 1>}, {transform_indices = @transform_3, window_bounds = array<i64: 1, 384>}, {transform_indices = @transform_4, window_bounds = array<i64: 1, 384>}]} {
    %c0 = arith.constant 0 : index
    %c0_0 = arith.constant 0 : index
    %0 = vector.load %arg2[%c0, %c0_0] : memref<3x32xf32, #tpu.memory_space<vmem>>, vector<3x32xf32>
    %c0_1 = arith.constant 0 : index
    %c0_2 = arith.constant 0 : index
    %1 = vector.load %arg1[%c0_1, %c0_2] : memref<384x32xf32, #tpu.memory_space<vmem>>, vector<384x32xf32>
    %cst = arith.constant dense<0.000000e+00> : vector<3x384xf32>
    %2 = tpu.matmul %0, %1, %cst {dimension_numbers = #tpu.dot_dimension_numbers<[1], [1], [0], [0], [0, 0, 1, 0], [], []>} : vector<3x32xf32>, vector<384x32xf32>, vector<3x384xf32> -> vector<3x384xf32>
    %c0_3 = arith.constant 0 : index
    %c0_4 = arith.constant 0 : index
    %3 = vector.load %arg3[%c0_3, %c0_4] : memref<3x1xf32, #tpu.memory_space<vmem>>, vector<3x1xf32>
    %4 = vector.broadcast %3 : vector<3x1xf32> to vector<3x384xf32>
    %5 = arith.addf %2, %4 : vector<3x384xf32>
    %c0_5 = arith.constant 0 : index
    %c0_6 = arith.constant 0 : index
    %6 = vector.load %arg4[%c0_5, %c0_6] : memref<1x384xf32, #tpu.memory_space<vmem>>, vector<1x384xf32>
    %7 = vector.extract_strided_slice %5 {offsets = [0, 0], sizes = [1, 384], strides = [1, 1]} : vector<3x384xf32> to vector<1x384xf32>
    %8 = vector.extract_strided_slice %5 {offsets = [1, 0], sizes = [1, 384], strides = [1, 1]} : vector<3x384xf32> to vector<1x384xf32>
    %9 = vector.extract_strided_slice %5 {offsets = [2, 0], sizes = [1, 384], strides = [1, 1]} : vector<3x384xf32> to vector<1x384xf32>
    %10 = arith.subf %8, %7 : vector<1x384xf32>
    %11 = arith.mulf %10, %6 : vector<1x384xf32>
    %12 = arith.addf %7, %11 : vector<1x384xf32>
    %cst_7 = arith.constant -1.000000e+00 : f32
    %cst_8 = arith.constant 1.000000e+00 : f32
    %13 = vector.broadcast %cst_7 : f32 to vector<1x384xf32>
    %14 = arith.maximumf %13, %9 : vector<1x384xf32>
    %15 = vector.broadcast %cst_8 : f32 to vector<1x384xf32>
    %16 = arith.minimumf %15, %14 : vector<1x384xf32>
    %17 = arith.addf %12, %16 : vector<1x384xf32>
    %c0_9 = arith.constant 0 : index
    %c0_10 = arith.constant 0 : index
    %18 = vector.load %arg5[%c0_9, %c0_10] : memref<1x384xf32, #tpu.memory_space<vmem>>, vector<1x384xf32>
    tpu.vector_store %arg5[%c0_9, %c0_10], %17 {strides = array<i32>} : memref<1x384xf32, #tpu.memory_space<vmem>>, vector<1x384xf32>,
    return
  }
  func.func @transform_0(%arg0: i32) -> (i32, i32) {
    %c0_i32 = arith.constant 0 : i32
    %c0_i32_0 = arith.constant 0 : i32
    return %arg0, %c0_i32 : i32, i32
  }
  func.func @transform_1(%arg0: i32) -> (i32, i32) {
    %c0_i32 = arith.constant 0 : i32
    %c0_i32_0 = arith.constant 0 : i32
    %c0_i32_1 = arith.constant 0 : i32
    return %c0_i32, %c0_i32_0 : i32, i32
  }
  func.func @transform_2(%arg0: i32) -> (i32, i32) {
    %c0_i32 = arith.constant 0 : i32
    %c0_i32_0 = arith.constant 0 : i32
    %c0_i32_1 = arith.constant 0 : i32
    return %c0_i32, %c0_i32_0 : i32, i32
  }
  func.func @transform_3(%arg0: i32) -> (i32, i32) {
    %c0_i32 = arith.constant 0 : i32
    %c0_i32_0 = arith.constant 0 : i32
    return %c0_i32, %arg0 : i32, i32
  }
  func.func @transform_4(%arg0: i32) -> (i32, i32) {
    %c0_i32 = arith.constant 0 : i32
    %c0_i32_0 = arith.constant 0 : i32
    return %c0_i32, %arg0 : i32, i32
  }
}

module attributes {stable_mosaic.version = 11 : i64} {
  func.func @_model_kernel(%arg0: i32, %arg1: memref<384x32xf32, #tpu.memory_space<vmem>>, %arg2: memref<3x32xf32, #tpu.memory_space<vmem>>, %arg3: memref<3x1xf32, #tpu.memory_space<vmem>>, %arg4: memref<1x384xf32, #tpu.memory_space<vmem>>, %arg5: memref<1x384xf32, #tpu.memory_space<vmem>>) attributes {dimension_semantics = [#tpu.dimension_semantics<parallel>], iteration_bounds = array<i64: 1>, scalar_prefetch = 0 : i64, scratch_operands = 0 : i64, tpu.core_type = #tpu.core_type<tc>, window_params = [{transform_indices = @transform_0, window_bounds = array<i64: 384, 32>}, {pipeline_mode = #tpu.pipeline_mode<synchronous>, transform_indices = @transform_1, window_bounds = array<i64: 3, 32>}, {pipeline_mode = #tpu.pipeline_mode<synchronous>, transform_indices = @transform_2, window_bounds = array<i64: 3, 1>}, {transform_indices = @transform_3, window_bounds = array<i64: 1, 384>}, {transform_indices = @transform_4, window_bounds = array<i64: 1, 384>}]} {
    %c0 = arith.constant 0 : index
    %c0_0 = arith.constant 0 : index
    %0 = vector.load %arg2[%c0, %c0_0] : memref<3x32xf32, #tpu.memory_space<vmem>>, vector<3x32xf32>
    %c0_1 = arith.constant 0 : index
    %c0_2 = arith.constant 0 : index
    %1 = vector.load %arg1[%c0_1, %c0_2] : memref<384x32xf32, #tpu.memory_space<vmem>>, vector<384x32xf32>
    %cst = arith.constant dense<0.000000e+00> : vector<3x384xf32>
    %2 = tpu.matmul %0, %1, %cst {dimension_numbers = #tpu.dot_dimension_numbers<[1], [1], [0], [0], [0, 0, 1, 0], [], []>} : vector<3x32xf32>, vector<384x32xf32>, vector<3x384xf32> -> vector<3x384xf32>
    %c0_3 = arith.constant 0 : index
    %c0_4 = arith.constant 0 : index
    %3 = vector.load %arg3[%c0_3, %c0_4] : memref<3x1xf32, #tpu.memory_space<vmem>>, vector<3x1xf32>
    %4 = vector.broadcast %3 : vector<3x1xf32> to vector<3x384xf32>
    %5 = arith.addf %2, %4 : vector<3x384xf32>
    %c0_5 = arith.constant 0 : index
    %c0_6 = arith.constant 0 : index
    %6 = vector.load %arg4[%c0_5, %c0_6] : memref<1x384xf32, #tpu.memory_space<vmem>>, vector<1x384xf32>
    %7 = vector.extract_strided_slice %5 {offsets = [0, 0], sizes = [1, 384], strides = [1, 1]} : vector<3x384xf32> to vector<1x384xf32>
    %8 = vector.extract_strided_slice %5 {offsets = [1, 0], sizes = [1, 384], strides = [1, 1]} : vector<3x384xf32> to vector<1x384xf32>
    %9 = vector.extract_strided_slice %5 {offsets = [2, 0], sizes = [1, 384], strides = [1, 1]} : vector<3x384xf32> to vector<1x384xf32>
    %10 = arith.subf %8, %7 : vector<1x384xf32>
    %11 = arith.mulf %10, %6 : vector<1x384xf32>
    %12 = arith.addf %7, %11 : vector<1x384xf32>
    %cst_7 = arith.constant -1.000000e+00 : f32
    %cst_8 = arith.constant 1.000000e+00 : f32
    %13 = vector.broadcast %cst_7 : f32 to vector<1x384xf32>
    %14 = arith.maximumf %13, %9 : vector<1x384xf32>
    %15 = vector.broadcast %cst_8 : f32 to vector<1x384xf32>
    %16 = arith.minimumf %15, %14 : vector<1x384xf32>
    %17 = arith.addf %12, %16 : vector<1x384xf32>
    %c0_9 = arith.constant 0 : index
    %c0_10 = arith.constant 0 : index
    %18 = vector.load %arg5[%c0_9, %c0_10] : memref<1x384xf32, #tpu.memory_space<vmem>>, vector<1x384xf32>
    tpu.vector_store %arg5[%c0_9, %c0_10], %17 {strides = array<i32>} : memref<1x384xf32, #tpu.memory_space<vmem>>, vector<1x384xf32>,
    return
  }
  func.func @transform_0(%arg0: i32) -> (i32, i32) {
    %c0_i32 = arith.constant 0 : i32
    %c0_i32_0 = arith.constant 0 : i32
    return %arg0, %c0_i32 : i32, i32
  }
  func.func @transform_1(%arg0: i32) -> (i32, i32) {
    %c0_i32 = arith.constant 0 : i32
    %c0_i32_0 = arith.constant 0 : i32
    %c0_i32_1 = arith.constant 0 : i32
    return %c0_i32, %c0_i32_0 : i32, i32
  }
  func.func @transform_2(%arg0: i32) -> (i32, i32) {
    %c0_i32 = arith.constant 0 : i32
    %c0_i32_0 = arith.constant 0 : i32
    %c0_i32_1 = arith.constant 0 : i32
    return %c0_i32, %c0_i32_0 : i32, i32
  }
  func.func @transform_3(%arg0: i32) -> (i32, i32) {
    %c0_i32 = arith.constant 0 : i32
    %c0_i32_0 = arith.constant 0 : i32
    return %c0_i32, %arg0 : i32, i32
  }
  func.func @transform_4(%arg0: i32) -> (i32, i32) {
    %c0_i32 = arith.constant 0 : i32
    %c0_i32_0 = arith.constant 0 : i32
    return %c0_i32, %arg0 : i32, i32
  }
}

</mosaic_0001>

<bundles_post_ra>
// kernel: tpu_custom_call.1
= control target key start
LH: loop header
LB: loop body
LE: loop exit
PB: predicated region body
PF: predicated region fallthrough
CT: control target
= control target key end

     0   :  { %s812_s15 = sld [smem:[#allocation0]]   ;;  %s962_s0 = inlined_call_operand.vmem [shape: f32[300,32], index: 0, kind: input, shape index: {}]   ;;  %s963_s1 = inlined_call_operand.vmem [shape: f32[3,32], index: 1, kind: input, shape index: {}]   ;;  %s964_s2 = inlined_call_operand.vmem [shape: f32[3,1], index: 2, kind: input, shape index: {}]   ;;  %s965_s3 = inlined_call_operand.vmem [shape: f32[1,384], index: 3, kind: input, shape index: {}]   ;;  %s966_s4 = inlined_call_operand.hbm [shape: f32[1,384], index: 4, kind: output, shape index: {}]  }
   0x1   :  { %v781_v0 = vmov 0.0|0.0   ;;  %vm115_vm0 = vcmask 261120   ;;  %vm782_vm1 = vmmov 0   ;;  %v783_v1 = vmov 0.0   ;;  %v821_v2 = vld [vmem:[%s963_s1] sm:$0x7] }
   0x2   :  { %716 = vmatprep.subr.bf16.mxu1 %v781_v0  ;;  %665 = vmatprep.mubr.msk.f32.mxu1 %vm782_vm1, %v783_v1  ;;  %v109_v3 = vld [vmem:[%s964_s2] sm:$0x7]  ;;  %v784_v4 = vmov 0  }
   0x3   :  { %614 = vmatprep.mubr.msk.f32.mxu0 %vm115_vm0, %v821_v2  ;;  %754 = vset.pattern.permute.xlu0 %v784_v4 }
   0x6   :  { %s815_s16 = smul.u32 48, %s812_s15 }
   0x8   :  { %p47_p0 = scmp.lt.s32.totalorder %s815_s16, 37 }
   0x9   :  { %9 = vsyncpa [#allocation3], 0  ;;  %112 = vperm.xlu0 %754, %v109_v3   ;;  %s505_s30 = scalar_lea.hbm %s966_s4, %s815_s16 }
   0xa   :  { %s48_s21 = scalar_select %p47_p0, %s815_s16, 37  ;;  %vm837_vm2 = vmpackc.low %vm115_vm0, %vm115_vm0 }
   0xc   :  { %s526_s22 = sshll.u32 %s48_s21, 3 }
   0xd   :  { %s833_s1 = scalar_lea.vmem %s962_s0, %s526_s22  ;;  %s54_s0 = smul.u32 3, %s812_s15 }
   0xe   :  { %v77_v6 = vld [vmem:[%s833_s1 + $0x80] sm:$0xff]  ;;  %v78_v7 = vld [vmem:[%s833_s1 + $0x88] sm:$0xff]  ;;  %v79_v15 = vld [vmem:[%s833_s1 + $0x90] sm:$0xff] }
   0xf   :  { %v93_v8 = vld [vmem:[%s833_s1 + $0x100] sm:$0xff]  ;;  %v668_v9 = vpack.c.bf16 %v78_v7, %v77_v6  ;;  %v94_v10 = vld [vmem:[%s833_s1 + $0x108] sm:$0xff]  ;;  %v80_v16 = vld [vmem:[%s833_s1 + $0x98] sm:$0xff]  ;;  %p55_p1 = scmp.lt.s32.totalorder %s54_s0, 2 }
  0x10   :  { %v61_v11 = vld [vmem:[%s833_s1] sm:$0xff]  ;;  %v62_v12 = vld [vmem:[%s833_s1 + $0x8] sm:$0xff]  ;;  %v717_v13 = vpack.c.bf16 %v94_v10, %v93_v8  ;;  %v674_v17 = vpack.c.bf16 %v80_v16, %v79_v15  ;;  %v95_v18 = vld [vmem:[%s833_s1 + $0x110] sm:$0xff] }
  0x11   :  { %v671_v14 = vpack.c.bf16 %v62_v12, %v61_v11  ;;  %670 = vmatprep.subr.msk.bf16.mxu0 %vm837_vm2, %v668_v9  ;;  %v96_v19 = vld [vmem:[%s833_s1 + $0x118] sm:$0xff]  ;;  %v63_v20 = vld [vmem:[%s833_s1 + $0x10] sm:$0xff]  ;;  %v81_v22 = vld [vmem:[%s833_s1 + $0xa0] sm:$0xff]  ;;  %s970_s0 = smov (!%p55_p1, %s54_s0), 2 }
  0x12   :  { %719 = vmatpush3.bf16.xpose.msk.msra.mxu1 %vm837_vm2, %v717_v13  ;;  %v64_v21 = vld [vmem:[%s833_s1 + $0x18] sm:$0xff]  ;;  %v82_v23 = vld [vmem:[%s833_s1 + $0xa8] sm:$0xff]  ;;  %v721_v24 = vpack.c.bf16 %v96_v19, %v95_v18  ;;  %v97_v27 = vld [vmem:[%s833_s1 + $0x120] sm:$0xff]  ;;  %s57_s26 = scalar_lea.vmem %s965_s3, %s970_s0  ;;  %s786_s3 = smov [#allocation2]  }
  0x13   :  { %673 = vmatpush3.bf16.xpose.msk.msra.mxu0 %vm837_vm2, %v671_v14  ;;  %720 = vmatprep.subr.bf16.mxu1 %v781_v0  ;;  %v677_v25 = vpack.c.bf16 %v64_v21, %v63_v20  ;;  %v680_v26 = vpack.c.bf16 %v82_v23, %v81_v22  ;;  %v98_v28 = vld [vmem:[%s833_s1 + $0x128] sm:$0xff]  ;;  %v65_v29 = vld [vmem:[%s833_s1 + $0x20] sm:$0xff]  ;;  %v83_v31 = vld [vmem:[%s833_s1 + $0xb0] sm:$0xff]  ;;  %s507_s27 = sshll.u32 %s786_s3, 4  ;;  %s508_s27 = int_to_ptr.vmem [resolvable:$true] %s507_s27 }
  0x14   :  { %676 = vmatprep.subr.msk.bf16.mxu0 %vm837_vm2, %v674_v17  ;;  %v66_v30 = vld [vmem:[%s833_s1 + $0x28] sm:$0xff]  ;;  %v84_v32 = vld [vmem:[%s833_s1 + $0xb8] sm:$0xff]  ;;  %v725_v33 = vpack.c.bf16 %v98_v28, %v97_v27  ;;  %v99_v36 = vld [vmem:[%s833_s1 + $0x130] sm:$0xff]  ;;  %s755_s5 = scalar_lea.vmem %s508_s27, 48  ;;  %s759_s6 = scalar_lea.vmem %s508_s27, 64 }
  0x15   :  { %v683_v34 = vpack.c.bf16 %v66_v30, %v65_v29  ;;  %v686_v35 = vpack.c.bf16 %v84_v32, %v83_v31  ;;  %v100_v37 = vld [vmem:[%s833_s1 + $0x138] sm:$0xff]  ;;  %v67_v38 = vld [vmem:[%s833_s1 + $0x30] sm:$0xff]  ;;  %v85_v40 = vld [vmem:[%s833_s1 + $0xc0] sm:$0xff]  ;;  %p756_p2 = scmp.ne.s32.totalorder %s508_s27, %s755_s5  ;;  %p760_p3 = scmp.lt.s32.totalorder %s508_s27, %s508_s27 }
  0x16   :  { %v68_v39 = vld [vmem:[%s833_s1 + $0x38] sm:$0xff]  ;;  %v86_v41 = vld [vmem:[%s833_s1 + $0xc8] sm:$0xff]  ;;  %v729_v42 = vpack.c.bf16 %v100_v37, %v99_v36  ;;  %v101_v45 = vld [vmem:[%s833_s1 + $0x140] sm:$0xff]  ;;  %v785_v37 = vmov 1966171168   ;;  %p761_p4 = scmp.lt.s32.totalorder %s759_s6, %s755_s5 }
  0x17   :  { %v689_v43 = vpack.c.bf16 %v68_v39, %v67_v38  ;;  %v692_v44 = vpack.c.bf16 %v86_v41, %v85_v40  ;;  %v102_v46 = vld [vmem:[%s833_s1 + $0x148] sm:$0xff]  ;;  %v69_v47 = vld [vmem:[%s833_s1 + $0x40] sm:$0xff]  ;;  %v87_v49 = vld [vmem:[%s833_s1 + $0xd0] sm:$0xff]  ;;  %v471_v38 = vunpack.c.l.s4 %v785_v37 }
  0x18   :  { %v70_v48 = vld [vmem:[%s833_s1 + $0x48] sm:$0xff]  ;;  %v88_v50 = vld [vmem:[%s833_s1 + $0xd8] sm:$0xff]  ;;  %v733_v51 = vpack.c.bf16 %v102_v46, %v101_v45  ;;  %v103_v54 = vld [vmem:[%s833_s1 + $0x150] sm:$0xff]  ;;  %p762_p5 = por %p761_p4, %p760_p3 }
  0x19   :  { %v695_v52 = vpack.c.bf16 %v70_v48, %v69_v47  ;;  %v698_v53 = vpack.c.bf16 %v88_v50, %v87_v49  ;;  %v104_v55 = vld [vmem:[%s833_s1 + $0x158] sm:$0xff]  ;;  %v71_v56 = vld [vmem:[%s833_s1 + $0x50] sm:$0xff]  ;;  %v89_v58 = vld [vmem:[%s833_s1 + $0xe0] sm:$0xff]  ;;  %v472_v48 = vunpack.c.0.s8 %v471_v38 }
  0x1a   :  { %723 = vmatpush3.bf16.xpose.msk.msra.mxu1 %vm837_vm2, %v721_v24  ;;  %v72_v57 = vld [vmem:[%s833_s1 + $0x58] sm:$0xff]  ;;  %v90_v59 = vld [vmem:[%s833_s1 + $0xe8] sm:$0xff]  ;;  %v737_v60 = vpack.c.bf16 %v104_v55, %v103_v54  ;;  %v105_v63 = vld [vmem:[%s833_s1 + $0x160] sm:$0xff]  ;;  %p763_p6 = pnand %p762_p5, %p756_p2 }
  0x1b   :  { %679 = vmatpush3.bf16.xpose.msk.msra.mxu0 %vm837_vm2, %v677_v25  ;;  %724 = vmatprep.subr.bf16.mxu1 %v781_v0  ;;  %v701_v61 = vpack.c.bf16 %v72_v57, %v71_v56  ;;  %v704_v62 = vpack.c.bf16 %v90_v59, %v89_v58  ;;  %v106_v1 = vld [vmem:[%s833_s1 + $0x168] sm:$0xff]  ;;  %v73_v3 = vld [vmem:[%s833_s1 + $0x60] sm:$0xff]  ;;  %v91_v6 = vld [vmem:[%s833_s1 + $0xf0] sm:$0xff] }
  0x1c   :  { %682 = vmatprep.subr.msk.bf16.mxu0 %vm837_vm2, %v680_v26  ;;  %v74_v4 = vld [vmem:[%s833_s1 + $0x68] sm:$0xff]  ;;  %v92_v7 = vld [vmem:[%s833_s1 + $0xf8] sm:$0xff]  ;;  %v741_v8 = vpack.c.bf16 %v106_v1, %v105_v63  ;;  %v107_v11 = vld [vmem:[%s833_s1 + $0x170] sm:$0xff] }
  0x1d   :  { %v707_v9 = vpack.c.bf16 %v74_v4, %v73_v3  ;;  %v710_v10 = vpack.c.bf16 %v92_v7, %v91_v6  ;;  %v108_v12 = vld [vmem:[%s833_s1 + $0x178] sm:$0xff]  ;;  %v75_v13 = vld [vmem:[%s833_s1 + $0x70] sm:$0xff]  ;;  %v404_v20 = vld [vmem:[%s57_s26] sm:$0x7] }
  0x1e   :  { %v76_v14 = vld [vmem:[%s833_s1 + $0x78] sm:$0xff]  ;;  %v745_v15 = vpack.c.bf16 %v108_v12, %v107_v11 }
  0x1f   :  { %v713_v16 = vpack.c.bf16 %v76_v14, %v75_v13 }
  0x22   :  { %727 = vmatpush3.bf16.xpose.msk.msra.mxu1 %vm837_vm2, %v725_v33 }
  0x23   :  { %685 = vmatpush3.bf16.xpose.msk.msra.mxu0 %vm837_vm2, %v683_v34  ;;  %728 = vmatprep.subr.bf16.mxu1 %v781_v0 }
  0x24   :  { %688 = vmatprep.subr.msk.bf16.mxu0 %vm837_vm2, %v686_v35 }
  0x2a   :  { %731 = vmatpush3.bf16.xpose.msk.msra.mxu1 %vm837_vm2, %v729_v42 }
  0x2b   :  { %691 = vmatpush3.bf16.xpose.msk.msra.mxu0 %vm837_vm2, %v689_v43  ;;  %732 = vmatprep.subr.bf16.mxu1 %v781_v0 }
  0x2c   :  { %694 = vmatprep.subr.msk.bf16.mxu0 %vm837_vm2, %v692_v44 }
  0x32   :  { %735 = vmatpush3.bf16.xpose.msk.msra.mxu1 %vm837_vm2, %v733_v51 }
  0x33   :  { %697 = vmatpush3.bf16.xpose.msk.msra.mxu0 %vm837_vm2, %v695_v52  ;;  %736 = vmatprep.subr.bf16.mxu1 %v781_v0 }
  0x34   :  { %700 = vmatprep.subr.msk.bf16.mxu0 %vm837_vm2, %v698_v53 }
  0x3a   :  { %739 = vmatpush3.bf16.xpose.msk.msra.mxu1 %vm837_vm2, %v737_v60 }
  0x3b   :  { %703 = vmatpush3.bf16.xpose.msk.msra.mxu0 %vm837_vm2, %v701_v61  ;;  %740 = vmatprep.subr.bf16.mxu1 %v781_v0 }
  0x3c   :  { %706 = vmatprep.subr.msk.bf16.mxu0 %vm837_vm2, %v704_v62 }
  0x42   :  { %743 = vmatpush3.bf16.xpose.msk.msra.mxu1 %vm837_vm2, %v741_v8 }
  0x43   :  { %709 = vmatpush3.bf16.xpose.msk.msra.mxu0 %vm837_vm2, %v707_v9  ;;  %744 = vmatprep.subr.bf16.mxu1 %v781_v0  ;;  %v418_v0 = vlaneseq }
  0x44   :  { %712 = vmatprep.subr.msk.bf16.mxu0 %vm837_vm2, %v710_v10 }
  0x45   :  { %v419_v17 = vshrl.u32 %v418_v0, 7  ;;  %vm495_vm3 = vcmp.lt.s32.totalorder %v418_v0, 384 }
  0x47   :  { %v428_v19 = vsub.s32 2, %v419_v17  ;;  %v420_v5 = vsub.s32 0, %v419_v17  ;;  %v424_v23 = vsub.s32 1, %v419_v17  ;;  %v475_v58 = vsub.s32 %v472_v48, %v419_v17 }
  0x49   :  { %v429_v28 = vrot.slane %v404_v20, %v428_v19  ;;  %v421_v31 = vrot.slane %v404_v20, %v420_v5  ;;  %v425_v33 = vrot.slane %v404_v20, %v424_v23 }
  0x4a   :  { %747 = vmatpush3.bf16.xpose.msk.msra.mxu1 %vm837_vm2, %v745_v15 }
  0x4b   :  { %715 = vmatpush3.bf16.xpose.msk.msra.mxu0 %vm837_vm2, %v713_v16 }
  0x51   :  { %666 = vmatmul.mubr.msk.f32.vlgmr.msra.gmra.mrb[0].mxu1 %vm115_vm0, %v821_v2 }
  0x52   :  { %615 = vmatmul.mubr.msk.f32.vlgmr.msra.gmra.mrb[0].mxu0 %vm115_vm0, %v821_v2 }
  0x88   :  { %v113_v18 = vpop.permute.xlu0 %112 }
 0x124   :  { %v400_v21 = vpop.f32.mrb[0].mxu1 }
 0x125   :  { %v329_v22 = vpop.f32.mrb[0].mxu0  ;;  %v401_v24 = vadd.f32 %v400_v21, %v113_v18  ;;  %v667_v2 = vpop.f32.mrb[1].mxu1 }
 0x126   :  { %v330_v25 = vadd.f32 %v329_v22, %v113_v18  ;;  %v331_v26 = vpop.f32.mrb[1].mxu0 }
 0x127   :  { %v332_v27 = vadd.f32 %v331_v26, %v113_v18  ;;  %v410_v29 = vrot.slane %v401_v24, 7  ;;  %v579_v42 = vclamps-f32 %v401_v24, 1.0 }
 0x128   :  { %v408_v30 = vrot.slane %v330_v25, 7  ;;  %v577_v39 = vclamps-f32 %v330_v25, 1.0 }
 0x129   :  { %v409_v32 = vrot.slane %v332_v27, 7  ;;  %v416_v34 = vsub.f32 %v401_v24, %v410_v29  ;;  %v578_v43 = vclamps-f32 %v332_v27, 1.0  ;;  %v459_v52 = vrot.slane %v579_v42, 2 }
 0x12a   :  { %v414_v35 = vsub.f32 %v330_v25, %v408_v30  ;;  %v457_v49 = vrot.slane %v577_v39, 2 }
 0x12b   :  { %v415_v36 = vsub.f32 %v332_v27, %v409_v32  ;;  %v435_v41 = vmul.f32 %v429_v28, %v416_v34  ;;  %v458_v53 = vrot.slane %v578_v43, 2 }
 0x12c   :  { %v433_v40 = vmul.f32 %v421_v31, %v414_v35 }
 0x12d   :  { %v434_v44 = vmul.f32 %v425_v33, %v415_v36  ;;  %v441_v46 = vrot.slane %v435_v41, 1 }
 0x12e   :  { %v439_v45 = vrot.slane %v433_v40, 1 }
 0x12f   :  { %v440_v47 = vrot.slane %v434_v44, 1  ;;  %v447_v51 = vadd.f32 %v441_v46, %v401_v24 }
 0x130   :  { %v445_v50 = vadd.f32 %v439_v45, %v330_v25 }
 0x131   :  { %v446_v54 = vadd.f32 %v440_v47, %v332_v27  ;;  %v465_v57 = vadd.f32 %v459_v52, %v447_v51 }
 0x132   :  { %v463_v55 = vadd.f32 %v457_v49, %v445_v50 }
 0x133   :  { %v464_v56 = vadd.f32 %v458_v53, %v446_v54  ;;  %v483_v61 = vrot.slane %v465_v57, %v475_v58 }
 0x135   :  { %v469_v59 = vcombine.low %v463_v55, %v464_v56 }
 0x137   :  { %v476_v60 = vrot.slane %v469_v59, %v475_v58 }
 0x139   :  { %v484_v62 = vcombine.low %v476_v60, %v483_v61 }
 0x13b   :  { %v491_v63 = vrot.slane %v484_v62, %v475_v58 }
 0x13d   :  { %497 = vst.msk [vmem:[#allocation2] sm:$0x7] %vm495_vm3, %v491_v63 }
 0x13e   :  { %766 = shalt.err (!%p763_p6)
}
 0x13f   :  { %s767_s7 = scalar_lea.hbm %s505_s30, 48  ;;  %s769_s10 = scalar_lea.hbm %s966_s4, 48 }
 0x140   :  { %p768_p7 = scmp.ne.s32.totalorder %s505_s30, %s767_s7  ;;  %p770_p8 = scmp.lt.u32.totalorder %s505_s30, %s966_s4 }
 0x141   :  { %p771_p9 = scmp.lt.u32.totalorder %s769_s10, %s767_s7  ;;  %p773_p11 = scmp.lt.u32.totalorder %s767_s7, %s505_s30 }
 0x143   :  { %p772_p10 = por %p771_p9, %p770_p8 }
 0x145   :  { %p774_p12 = por %p773_p11, %p772_p10 }
 0x147   :  { %p775_p13 = pnand %p774_p12, %p768_p7 }
 0x149   :  { %778 = shalt.err (!%p775_p13)
}
 0x14a   :  { %510 = dma.vmem_to_hbm [thread:$0]  %s508_s27, 48, %s505_s30, [#allocation3]  }
 0x14b   :  { %779 = dma.done.wait [#allocation3], 48  }
 0x14c   :  { %780 = vsyncadd [#allocation3], 4294967248 }
 0x14d   :  { %514 = vsyncpa [#allocation3], 1 }

// kernel: tpu_custom_call.1
= control target key start
LH: loop header
LB: loop body
LE: loop exit
PB: predicated region body
PF: predicated region fallthrough
CT: control target
= control target key end

     0   :  { %vm73_vm0 = vcmask 261120   ;;  %v720_v3 = vmov 0.0|0.0   ;;  %vm721_vm2 = vmmov 0   ;;  %v722_v12 = vmov 0.0   ;;  %s986_s0 = inlined_call_operand.vmem [shape: f32[300,32], index: 0, kind: input, shape index: {}]   ;;  %s987_s1 = inlined_call_operand.vmem [shape: f32[3,32], index: 1, kind: input, shape index: {}]   ;;  %s988_s2 = inlined_call_operand.vmem [shape: f32[3,1], index: 2, kind: input, shape index: {}]   ;;  %s989_s3 = inlined_call_operand.vmem [shape: f32[1,384], index: 3, kind: input, shape index: {}]   ;;  %s990_s4 = inlined_call_operand.hbm [shape: f32[1,384], index: 4, kind: output, shape index: {}]  }
   0x1   :  { %v35_v0 = vld [vmem:[%s986_s0 + $0x80] sm:$0xff]  ;;  %v36_v1 = vld [vmem:[%s986_s0 + $0x88] sm:$0xff]  ;;  %657 = vmatprep.subr.bf16.mxu1 %v720_v3  ;;  %vm763_vm1 = vmpackc.low %vm73_vm0, %vm73_vm0  ;;  %606 = vmatprep.mubr.msk.f32.mxu1 %vm721_vm2, %v722_v12  ;;  %v723_v13 = vmov 0  }
   0x2   :  { %v51_v2 = vld [vmem:[%s986_s0 + $0x100] sm:$0xff]  ;;  %v609_v4 = vpack.c.bf16 %v36_v1, %v35_v0  ;;  %v52_v6 = vld [vmem:[%s986_s0 + $0x108] sm:$0xff]  ;;  %v37_v10 = vld [vmem:[%s986_s0 + $0x90] sm:$0xff]  ;;  %695 = vset.pattern.permute.xlu0 %v723_v13 }
   0x3   :  { %v19_v7 = vld [vmem:[%s986_s0] sm:$0xff]  ;;  %v658_v8 = vpack.c.bf16 %v52_v6, %v51_v2  ;;  %v20_v9 = vld [vmem:[%s986_s0 + $0x8] sm:$0xff]  ;;  %v38_v11 = vld [vmem:[%s986_s0 + $0x98] sm:$0xff] }
   0x4   :  { %611 = vmatprep.subr.msk.bf16.mxu0 %vm763_vm1, %v609_v4  ;;  %v612_v14 = vpack.c.bf16 %v20_v9, %v19_v7  ;;  %v615_v15 = vpack.c.bf16 %v38_v11, %v37_v10  ;;  %v53_v16 = vld [vmem:[%s986_s0 + $0x110] sm:$0xff]  ;;  %v54_v17 = vld [vmem:[%s986_s0 + $0x118] sm:$0xff]  ;;  %v39_v20 = vld [vmem:[%s986_s0 + $0xa0] sm:$0xff] }
   0x5   :  { %660 = vmatpush3.bf16.xpose.msk.msra.mxu1 %vm763_vm1, %v658_v8  ;;  %v21_v18 = vld [vmem:[%s986_s0 + $0x10] sm:$0xff]  ;;  %v22_v19 = vld [vmem:[%s986_s0 + $0x18] sm:$0xff]  ;;  %v40_v21 = vld [vmem:[%s986_s0 + $0xa8] sm:$0xff]  ;;  %v662_v22 = vpack.c.bf16 %v54_v17, %v53_v16 }
   0x6   :  { %614 = vmatpush3.bf16.xpose.msk.msra.mxu0 %vm763_vm1, %v612_v14  ;;  %661 = vmatprep.subr.bf16.mxu1 %v720_v3  ;;  %v618_v23 = vpack.c.bf16 %v22_v19, %v21_v18  ;;  %v621_v24 = vpack.c.bf16 %v40_v21, %v39_v20  ;;  %v55_v25 = vld [vmem:[%s986_s0 + $0x120] sm:$0xff]  ;;  %v56_v26 = vld [vmem:[%s986_s0 + $0x128] sm:$0xff]  ;;  %v41_v29 = vld [vmem:[%s986_s0 + $0xb0] sm:$0xff] }
   0x7   :  { %617 = vmatprep.subr.msk.bf16.mxu0 %vm763_vm1, %v615_v15  ;;  %v23_v27 = vld [vmem:[%s986_s0 + $0x20] sm:$0xff]  ;;  %v24_v28 = vld [vmem:[%s986_s0 + $0x28] sm:$0xff]  ;;  %v42_v30 = vld [vmem:[%s986_s0 + $0xb8] sm:$0xff]  ;;  %v666_v31 = vpack.c.bf16 %v56_v26, %v55_v25 }
   0x8   :  { %v837_v32 = vld [vmem:[%s987_s1] sm:$0x7]  ;;  %v624_v34 = vpack.c.bf16 %v24_v28, %v23_v27 }
   0x9   :  { %v67_v33 = vld [vmem:[%s988_s2] sm:$0x7]  ;;  %555 = vmatprep.mubr.msk.f32.mxu0 %vm73_vm0, %v837_v32 }
   0xa   :  { %70 = vperm.xlu0 %695, %v67_v33  }
   0xd   :  { %664 = vmatpush3.bf16.xpose.msk.msra.mxu1 %vm763_vm1, %v662_v22 }
   0xe   :  { %620 = vmatpush3.bf16.xpose.msk.msra.mxu0 %vm763_vm1, %v618_v23  ;;  %665 = vmatprep.subr.bf16.mxu1 %v720_v3 }
   0xf   :  { %623 = vmatprep.subr.msk.bf16.mxu0 %vm763_vm1, %v621_v24 }
  0x10   :  { %9 = vsyncpa [#allocation3], 0  ;;  %v627_v35 = vpack.c.bf16 %v42_v30, %v41_v29  ;;  %v57_v36 = vld [vmem:[%s986_s0 + $0x130] sm:$0xff]  ;;  %v58_v37 = vld [vmem:[%s986_s0 + $0x138] sm:$0xff]  ;;  %v376_v15 = vlaneseq }
  0x11   :  { %v25_v38 = vld [vmem:[%s986_s0 + $0x30] sm:$0xff]  ;;  %v26_v39 = vld [vmem:[%s986_s0 + $0x38] sm:$0xff]  ;;  %v43_v40 = vld [vmem:[%s986_s0 + $0xc0] sm:$0xff]  ;;  %v670_v42 = vpack.c.bf16 %v58_v37, %v57_v36 }
  0x12   :  { %v44_v41 = vld [vmem:[%s986_s0 + $0xc8] sm:$0xff]  ;;  %v630_v43 = vpack.c.bf16 %v26_v39, %v25_v38  ;;  %v59_v45 = vld [vmem:[%s986_s0 + $0x140] sm:$0xff]  ;;  %v45_v49 = vld [vmem:[%s986_s0 + $0xd0] sm:$0xff]  ;;  %v377_v16 = vshrl.u32 %v376_v15, 7  ;;  %v724_v38 = vmov 1966171168  }
  0x13   :  { %v633_v44 = vpack.c.bf16 %v44_v41, %v43_v40  ;;  %v60_v46 = vld [vmem:[%s986_s0 + $0x148] sm:$0xff]  ;;  %v27_v47 = vld [vmem:[%s986_s0 + $0x40] sm:$0xff]  ;;  %v46_v50 = vld [vmem:[%s986_s0 + $0xd8] sm:$0xff]  ;;  %v429_v39 = vunpack.c.l.s4 %v724_v38  ;;  %vm453_vm3 = vcmp.lt.s32.totalorder %v376_v15, 384 }
  0x14   :  { %v28_v48 = vld [vmem:[%s986_s0 + $0x48] sm:$0xff]  ;;  %v674_v51 = vpack.c.bf16 %v60_v46, %v59_v45  ;;  %v639_v53 = vpack.c.bf16 %v46_v50, %v45_v49  ;;  %v61_v54 = vld [vmem:[%s986_s0 + $0x150] sm:$0xff]  ;;  %v62_v55 = vld [vmem:[%s986_s0 + $0x158] sm:$0xff]  ;;  %v386_v18 = vsub.s32 2, %v377_v16  ;;  %v378_v21 = vsub.s32 0, %v377_v16 }
  0x15   :  { %668 = vmatpush3.bf16.xpose.msk.msra.mxu1 %vm763_vm1, %v666_v31  ;;  %v636_v52 = vpack.c.bf16 %v28_v48, %v27_v47  ;;  %v29_v56 = vld [vmem:[%s986_s0 + $0x50] sm:$0xff]  ;;  %v30_v57 = vld [vmem:[%s986_s0 + $0x58] sm:$0xff]  ;;  %v47_v58 = vld [vmem:[%s986_s0 + $0xe0] sm:$0xff]  ;;  %v678_v60 = vpack.c.bf16 %v62_v55, %v61_v54  ;;  %v382_v24 = vsub.s32 1, %v377_v16  ;;  %v430_v49 = vunpack.c.0.s8 %v429_v39 }
  0x16   :  { %626 = vmatpush3.bf16.xpose.msk.msra.mxu0 %vm763_vm1, %v624_v34  ;;  %669 = vmatprep.subr.bf16.mxu1 %v720_v3  ;;  %v48_v59 = vld [vmem:[%s986_s0 + $0xe8] sm:$0xff]  ;;  %v642_v61 = vpack.c.bf16 %v30_v57, %v29_v56  ;;  %v63_v63 = vld [vmem:[%s986_s0 + $0x160] sm:$0xff]  ;;  %v49_v4 = vld [vmem:[%s986_s0 + $0xf0] sm:$0xff] }
  0x17   :  { %629 = vmatprep.subr.msk.bf16.mxu0 %vm763_vm1, %v627_v35  ;;  %v645_v62 = vpack.c.bf16 %v48_v59, %v47_v58  ;;  %v64_v0 = vld [vmem:[%s986_s0 + $0x168] sm:$0xff]  ;;  %v31_v1 = vld [vmem:[%s986_s0 + $0x60] sm:$0xff]  ;;  %v50_v6 = vld [vmem:[%s986_s0 + $0xf8] sm:$0xff]  ;;  %v433_v58 = vsub.s32 %v430_v49, %v377_v16 }
  0x18   :  { %v32_v2 = vld [vmem:[%s986_s0 + $0x68] sm:$0xff]  ;;  %v682_v7 = vpack.c.bf16 %v64_v0, %v63_v63  ;;  %v651_v9 = vpack.c.bf16 %v50_v6, %v49_v4  ;;  %v65_v10 = vld [vmem:[%s986_s0 + $0x170] sm:$0xff]  ;;  %v66_v11 = vld [vmem:[%s986_s0 + $0x178] sm:$0xff] }
  0x19   :  { %v648_v8 = vpack.c.bf16 %v32_v2, %v31_v1  ;;  %v33_v12 = vld [vmem:[%s986_s0 + $0x70] sm:$0xff]  ;;  %v34_v13 = vld [vmem:[%s986_s0 + $0x78] sm:$0xff]  ;;  %v362_v20 = vld [vmem:[%s989_s3] sm:$0x7]  ;;  %s725_s3 = smov [#allocation2]  }
  0x1a   :  { %v654_v14 = vpack.c.bf16 %v34_v13, %v33_v12  ;;  %v387_v29 = vrot.slane %v362_v20, %v386_v18  ;;  %v379_v31 = vrot.slane %v362_v20, %v378_v21  ;;  %v383_v34 = vrot.slane %v362_v20, %v382_v24  ;;  %s462_s7 = sshll.u32 %s725_s3, 4  ;;  %s463_s7 = int_to_ptr.vmem [resolvable:$true] %s462_s7 }
  0x1b   :  { %s696_s2 = scalar_lea.vmem %s463_s7, 48  ;;  %s700_s8 = scalar_lea.vmem %s463_s7, 64 }
  0x1c   :  { %p697_p0 = scmp.ne.s32.totalorder %s463_s7, %s696_s2  ;;  %p701_p1 = scmp.lt.s32.totalorder %s463_s7, %s463_s7 }
  0x1d   :  { %672 = vmatpush3.bf16.xpose.msk.msra.mxu1 %vm763_vm1, %v670_v42  ;;  %p702_p2 = scmp.lt.s32.totalorder %s700_s8, %s696_s2 }
  0x1e   :  { %632 = vmatpush3.bf16.xpose.msk.msra.mxu0 %vm763_vm1, %v630_v43  ;;  %673 = vmatprep.subr.bf16.mxu1 %v720_v3 }
  0x1f   :  { %635 = vmatprep.subr.msk.bf16.mxu0 %vm763_vm1, %v633_v44  ;;  %p703_p3 = por %p702_p2, %p701_p1 }
  0x21   :  { %p704_p4 = pnand %p703_p3, %p697_p0 }
  0x25   :  { %676 = vmatpush3.bf16.xpose.msk.msra.mxu1 %vm763_vm1, %v674_v51 }
  0x26   :  { %638 = vmatpush3.bf16.xpose.msk.msra.mxu0 %vm763_vm1, %v636_v52  ;;  %677 = vmatprep.subr.bf16.mxu1 %v720_v3 }
  0x27   :  { %641 = vmatprep.subr.msk.bf16.mxu0 %vm763_vm1, %v639_v53 }
  0x2d   :  { %680 = vmatpush3.bf16.xpose.msk.msra.mxu1 %vm763_vm1, %v678_v60 }
  0x2e   :  { %644 = vmatpush3.bf16.xpose.msk.msra.mxu0 %vm763_vm1, %v642_v61  ;;  %681 = vmatprep.subr.bf16.mxu1 %v720_v3 }
  0x2f   :  { %647 = vmatprep.subr.msk.bf16.mxu0 %vm763_vm1, %v645_v62 }
  0x35   :  { %684 = vmatpush3.bf16.xpose.msk.msra.mxu1 %vm763_vm1, %v682_v7 }
  0x36   :  { %650 = vmatpush3.bf16.xpose.msk.msra.mxu0 %vm763_vm1, %v648_v8  ;;  %685 = vmatprep.subr.bf16.mxu1 %v720_v3  ;;  %v686_v3 = vpack.c.bf16 %v66_v11, %v65_v10 }
  0x37   :  { %653 = vmatprep.subr.msk.bf16.mxu0 %vm763_vm1, %v651_v9 }
  0x3d   :  { %688 = vmatpush3.bf16.xpose.msk.msra.mxu1 %vm763_vm1, %v686_v3 }
  0x3e   :  { %656 = vmatpush3.bf16.xpose.msk.msra.mxu0 %vm763_vm1, %v654_v14 }
  0x44   :  { %607 = vmatmul.mubr.msk.f32.vlgmr.msra.gmra.mrb[0].mxu1 %vm73_vm0, %v837_v32 }
  0x45   :  { %556 = vmatmul.mubr.msk.f32.vlgmr.msra.gmra.mrb[0].mxu0 %vm73_vm0, %v837_v32 }
  0x89   :  { %v71_v17 = vpop.permute.xlu0 %70 }
 0x117   :  { %v358_v19 = vpop.f32.mrb[0].mxu1 }
 0x118   :  { %v359_v22 = vadd.f32 %v358_v19, %v71_v17  ;;  %v287_v23 = vpop.f32.mrb[0].mxu0  ;;  %v608_v5 = vpop.f32.mrb[1].mxu1 }
 0x119   :  { %v288_v25 = vadd.f32 %v287_v23, %v71_v17  ;;  %v289_v26 = vpop.f32.mrb[1].mxu0 }
 0x11a   :  { %v368_v27 = vrot.slane %v359_v22, 7  ;;  %v290_v28 = vadd.f32 %v289_v26, %v71_v17  ;;  %v522_v42 = vclamps-f32 %v359_v22, 1.0 }
 0x11b   :  { %v366_v30 = vrot.slane %v288_v25, 7  ;;  %v520_v40 = vclamps-f32 %v288_v25, 1.0 }
 0x11c   :  { %v374_v32 = vsub.f32 %v359_v22, %v368_v27  ;;  %v367_v33 = vrot.slane %v290_v28, 7  ;;  %v521_v43 = vclamps-f32 %v290_v28, 1.0  ;;  %v417_v52 = vrot.slane %v522_v42, 2 }
 0x11d   :  { %v372_v35 = vsub.f32 %v288_v25, %v366_v30  ;;  %v415_v50 = vrot.slane %v520_v40, 2 }
 0x11e   :  { %v373_v36 = vsub.f32 %v290_v28, %v367_v33  ;;  %v393_v37 = vmul.f32 %v387_v29, %v374_v32  ;;  %v416_v53 = vrot.slane %v521_v43, 2 }
 0x11f   :  { %v391_v41 = vmul.f32 %v379_v31, %v372_v35 }
 0x120   :  { %v392_v44 = vmul.f32 %v383_v34, %v373_v36  ;;  %v399_v45 = vrot.slane %v393_v37, 1 }
 0x121   :  { %v397_v46 = vrot.slane %v391_v41, 1 }
 0x122   :  { %v398_v47 = vrot.slane %v392_v44, 1  ;;  %v405_v48 = vadd.f32 %v399_v45, %v359_v22 }
 0x123   :  { %v403_v51 = vadd.f32 %v397_v46, %v288_v25 }
 0x124   :  { %v404_v54 = vadd.f32 %v398_v47, %v290_v28  ;;  %v423_v57 = vadd.f32 %v417_v52, %v405_v48 }
 0x125   :  { %v421_v55 = vadd.f32 %v415_v50, %v403_v51 }
 0x126   :  { %v422_v56 = vadd.f32 %v416_v53, %v404_v54  ;;  %v441_v61 = vrot.slane %v423_v57, %v433_v58 }
 0x128   :  { %v427_v59 = vcombine.low %v421_v55, %v422_v56 }
 0x12a   :  { %v434_v60 = vrot.slane %v427_v59, %v433_v58 }
 0x12c   :  { %v442_v62 = vcombine.low %v434_v60, %v441_v61 }
 0x12e   :  { %v449_v63 = vrot.slane %v442_v62, %v433_v58 }
 0x130   :  { %455 = vst.msk [vmem:[#allocation2] sm:$0x7] %vm453_vm3, %v449_v63 }
 0x131   :  { %707 = shalt.err (!%p704_p4)
}
 0x132   :  { %s708_s11 = scalar_lea.hbm %s990_s4, 48 }
 0x133   :  { %p709_p5 = scmp.ne.s32.totalorder %s990_s4, %s708_s11  ;;  %p712_p6 = scmp.lt.u32.totalorder %s708_s11, %s990_s4 }
 0x135   :  { %p714_p7 = pnand %p712_p6, %p709_p5 }
 0x137   :  { %717 = shalt.err (!%p714_p7)
}
 0x138   :  { %465 = dma.vmem_to_hbm [thread:$0]  %s463_s7, 48, %s990_s4, [#allocation3]  }
 0x139   :  { %718 = dma.done.wait [#allocation3], 48  }
 0x13a   :  { %719 = vsyncadd [#allocation3], 4294967248 }
 0x13b   :  { %469 = vsyncpa [#allocation3], 1 }

</bundles_post_ra>
